<compile_context>
chip_gen: v6e
topology: v6e:2x2x1
jax: 0.10.0
libtpu: 0.0.40
codegen_flags: <defaults>
</compile_context>

<pallas_src>
import jax
import jax.numpy as jnp
from jax.experimental import pallas as pl
from jax.experimental.pallas import tpu as pltpu

# tanh-GELU constants with sqrt(2/pi) pre-folded into the polynomial.
_GELU_C1 = 0.7978845608028654            # sqrt(2/pi)
_GELU_C2 = 0.044715 * 0.7978845608028654  # 0.044715 * sqrt(2/pi)


def cs_ffn_kernel(x_ref, w1_ref, b1_ref, w2_ref, b2_ref, o_ref):
    # x_ref:  (N, C, L)   L = H*W, lane-dense (multiple of 128)
    # w1_ref: (HID, C)    first 1x1 conv weight
    # b1_ref: (HID, 1)    first 1x1 conv bias
    # w2_ref: (C, HID)    second 1x1 conv weight
    # b2_ref: (C, 1)      second 1x1 conv bias
    # o_ref:  (N, C, L)
    n_batch = x_ref.shape[0]
    seq_len = x_ref.shape[2]

    w1 = w1_ref[...]
    b1 = b1_ref[...]
    w2 = w2_ref[...]
    b2 = b2_ref[...]

    # Merge the batch into the lane axis: (C, N*L). Static, lane-aligned concat
    # (each slab is a multiple of 128 lanes) so the two matmuls below run once.
    x_wide = jnp.concatenate([x_ref[n] for n in range(n_batch)], axis=-1)  # (C, N*L)

    # Conv2d(dim, dim*mult, 1) == one channel matmul on the MXU + bias (1 broadcast).
    h = jnp.dot(w1, x_wide, preferred_element_type=jnp.float32) + b1       # (HID, N*L)

    # GELU (tanh approximation; tanh goes to the EUP slot, constants pre-folded).
    z = h * (_GELU_C1 + _GELU_C2 * (h * h))
    h = 0.5 * h * (1.0 + jnp.tanh(z))

    # Conv2d(dim*mult, dim, 1) == one channel matmul on the MXU + bias.
    y = jnp.dot(w2, h, preferred_element_type=jnp.float32) + b2            # (C, N*L)

    # Split back per batch on store; slice boundaries are multiples of 128 lanes,
    # so every store is an unmasked lane-dense vst.
    for n in range(n_batch):
        o_ref[n] = y[:, n * seq_len:(n + 1) * seq_len].astype(o_ref.dtype)

    # Dropout (p=0.0 / eval mode) is the identity and is intentionally omitted.


def cs_feedforward(x, w1, b1, w2, b2):
    """x: (N, C, H, W) f32.  w1: (HID, C, 1, 1), b1: (HID,), w2: (C, HID, 1, 1), b2: (C,)."""
    N, C, H, W = x.shape
    HID = w1.shape[0]
    L = H * W

    # Layout plumbing only: free reshapes (no slices, transposes or pads).
    x2 = x.reshape(N, C, L)
    w1m = w1.reshape(HID, C)
    w2m = w2.reshape(C, HID)
    b1c = b1.reshape(HID, 1)
    b2c = b2.reshape(C, 1)

    itemsize = jnp.dtype(x.dtype).itemsize
    cost = pl.CostEstimate(
        flops=2 * HID * C * N * L + 2 * C * HID * N * L,   # two channel matmuls
        transcendentals=HID * N * L,                        # one tanh per hidden elem
        bytes_accessed=itemsize * (2 * N * C * L + HID * C + C * HID + HID + C),
    )

    out2 = pl.pallas_call(
        cs_ffn_kernel,
        out_shape=jax.ShapeDtypeStruct((N, C, L), x.dtype),
        grid_spec=pltpu.PrefetchScalarGridSpec(
            num_scalar_prefetch=0,
            grid=(1,),  # whole problem in one invocation; everything fits in VMEM
            in_specs=[
                pl.BlockSpec((N, C, L), lambda i: (0, 0, 0)),
                pl.BlockSpec((HID, C), lambda i: (0, 0)),
                pl.BlockSpec((HID, 1), lambda i: (0, 0)),
                pl.BlockSpec((C, HID), lambda i: (0, 0)),
                pl.BlockSpec((C, 1), lambda i: (0, 0)),
            ],
            out_specs=pl.BlockSpec((N, C, L), lambda i: (0, 0, 0)),
        ),
        compiler_params=pltpu.CompilerParams(
            dimension_semantics=("arbitrary",),
        ),
        cost_estimate=cost,
    )(x2, w1m, b1c, w2m, b2c)

    return out2.reshape(N, C, H, W)


def reference(x, w1, b1, w2, b2):
    """Pure-JAX reference matching the PyTorch module (eval mode, tanh-GELU)."""
    h = jnp.einsum("oc,nchw->nohw", w1[:, :, 0, 0], x,
                   precision="highest") + b1[None, :, None, None]
    h = jax.nn.gelu(h, approximate=True)
    out = jnp.einsum("oc,nchw->nohw", w2[:, :, 0, 0], h,
                     precision="highest") + b2[None, :, None, None]
    return out


if __name__ == "__main__":
    N, DIM, MULT, H, W = 2, 8, 4, 16, 16
    HID = DIM * MULT

    key = jax.random.PRNGKey(0)
    k = jax.random.split(key, 5)
    x = jax.random.normal(k[0], (N, DIM, H, W), jnp.float32)

    # Deterministic synthetic parameters (same shapes as the PyTorch module).
    w1 = jax.random.normal(k[1], (HID, DIM, 1, 1), jnp.float32) * 0.2   # Conv2d(dim, dim*mult, 1).weight
    b1 = jax.random.normal(k[2], (HID,), jnp.float32) * 0.1             # Conv2d(dim, dim*mult, 1).bias
    w2 = jax.random.normal(k[3], (DIM, HID, 1, 1), jnp.float32) * 0.2   # Conv2d(dim*mult, dim, 1).weight
    b2 = jax.random.normal(k[4], (DIM,), jnp.float32) * 0.1             # Conv2d(dim*mult, dim, 1).bias

    out = cs_feedforward(x, w1, b1, w2, b2)
    out = jax.block_until_ready(out)

    ref = reference(x, w1, b1, w2, b2)
    assert out.shape == (N, DIM, H, W)
    err = float(jnp.max(jnp.abs(out - ref)))
    assert jnp.allclose(out, ref, atol=1e-4, rtol=1e-4), err

    print("KERNEL_OK")
</pallas_src>

<mosaic_0001>
module attributes {stable_mosaic.version = 11 : i64} {
  func.func @cs_ffn_kernel(%arg0: i32, %arg1: memref<2x8x256xf32, #tpu.memory_space<vmem>>, %arg2: memref<32x8xf32, #tpu.memory_space<vmem>>, %arg3: memref<32x1xf32, #tpu.memory_space<vmem>>, %arg4: memref<8x32xf32, #tpu.memory_space<vmem>>, %arg5: memref<8x1xf32, #tpu.memory_space<vmem>>, %arg6: memref<2x8x256xf32, #tpu.memory_space<vmem>>) attributes {dimension_semantics = [#tpu.dimension_semantics<arbitrary>], iteration_bounds = array<i64: 1>, scalar_prefetch = 0 : i64, scratch_operands = 0 : i64, tpu.core_type = #tpu.core_type<tc>, window_params = [{pipeline_mode = #tpu.pipeline_mode<synchronous>, transform_indices = @transform_0, window_bounds = array<i64: 2, 8, 256>}, {pipeline_mode = #tpu.pipeline_mode<synchronous>, transform_indices = @transform_1, window_bounds = array<i64: 32, 8>}, {pipeline_mode = #tpu.pipeline_mode<synchronous>, transform_indices = @transform_2, window_bounds = array<i64: 32, 1>}, {pipeline_mode = #tpu.pipeline_mode<synchronous>, transform_indices = @transform_3, window_bounds = array<i64: 8, 32>}, {pipeline_mode = #tpu.pipeline_mode<synchronous>, transform_indices = @transform_4, window_bounds = array<i64: 8, 1>}, {pipeline_mode = #tpu.pipeline_mode<synchronous>, transform_indices = @transform_5, window_bounds = array<i64: 2, 8, 256>}]} {
    %c0 = arith.constant 0 : index
    %c0_0 = arith.constant 0 : index
    %0 = vector.load %arg2[%c0, %c0_0] : memref<32x8xf32, #tpu.memory_space<vmem>>, vector<32x8xf32>
    %c0_1 = arith.constant 0 : index
    %c0_2 = arith.constant 0 : index
    %1 = vector.load %arg3[%c0_1, %c0_2] : memref<32x1xf32, #tpu.memory_space<vmem>>, vector<32x1xf32>
    %c0_3 = arith.constant 0 : index
    %c0_4 = arith.constant 0 : index
    %2 = vector.load %arg4[%c0_3, %c0_4] : memref<8x32xf32, #tpu.memory_space<vmem>>, vector<8x32xf32>
    %c0_5 = arith.constant 0 : index
    %c0_6 = arith.constant 0 : index
    %3 = vector.load %arg5[%c0_5, %c0_6] : memref<8x1xf32, #tpu.memory_space<vmem>>, vector<8x1xf32>
    %c0_7 = arith.constant 0 : index
    %c0_8 = arith.constant 0 : index
    %c0_9 = arith.constant 0 : index
    %4 = vector.load %arg1[%c0_7, %c0_8, %c0_9] : memref<2x8x256xf32, #tpu.memory_space<vmem>>, vector<1x8x256xf32>
    %5 = vector.shape_cast %4 : vector<1x8x256xf32> to vector<8x256xf32>
    %c1 = arith.constant 1 : index
    %c0_10 = arith.constant 0 : index
    %c0_11 = arith.constant 0 : index
    %6 = vector.load %arg1[%c1, %c0_10, %c0_11] : memref<2x8x256xf32, #tpu.memory_space<vmem>>, vector<1x8x256xf32>
    %7 = vector.shape_cast %6 : vector<1x8x256xf32> to vector<8x256xf32>
    %8 = tpu.concatenate %5, %7 in 1 : vector<8x256xf32>, vector<8x256xf32> -> vector<8x512xf32>
    %cst = arith.constant dense<0.000000e+00> : vector<32x512xf32>
    %9 = tpu.matmul %0, %8, %cst {dimension_numbers = #tpu.dot_dimension_numbers<[1], [0], [0], [1], [0, 0, 1, 1], [], []>} : vector<32x8xf32>, vector<8x512xf32>, vector<32x512xf32> -> vector<32x512xf32>
    %10 = vector.broadcast %1 : vector<32x1xf32> to vector<32x512xf32>
    %11 = arith.addf %9, %10 : vector<32x512xf32>
    %12 = arith.mulf %11, %11 : vector<32x512xf32>
    %cst_12 = arith.constant 0.0356774069 : f32
    %13 = vector.broadcast %cst_12 : f32 to vector<32x512xf32>
    %14 = arith.mulf %13, %12 : vector<32x512xf32>
    %cst_13 = arith.constant 0.797884583 : f32
    %15 = vector.broadcast %cst_13 : f32 to vector<32x512xf32>
    %16 = arith.addf %15, %14 : vector<32x512xf32>
    %17 = arith.mulf %11, %16 : vector<32x512xf32>
    %cst_14 = arith.constant 5.000000e-01 : f32
    %18 = vector.broadcast %cst_14 : f32 to vector<32x512xf32>
    %19 = arith.mulf %18, %11 : vector<32x512xf32>
    %20 = math.tanh %17 : vector<32x512xf32>
    %cst_15 = arith.constant 1.000000e+00 : f32
    %21 = vector.broadcast %cst_15 : f32 to vector<32x512xf32>
    %22 = arith.addf %21, %20 : vector<32x512xf32>
    %23 = arith.mulf %19, %22 : vector<32x512xf32>
    %cst_16 = arith.constant dense<0.000000e+00> : vector<8x512xf32>
    %24 = tpu.matmul %2, %23, %cst_16 {dimension_numbers = #tpu.dot_dimension_numbers<[1], [0], [0], [1], [0, 0, 1, 1], [], []>} : vector<8x32xf32>, vector<32x512xf32>, vector<8x512xf32> -> vector<8x512xf32>
    %25 = vector.broadcast %3 : vector<8x1xf32> to vector<8x512xf32>
    %26 = arith.addf %24, %25 : vector<8x512xf32>
    %27 = vector.extract_strided_slice %26 {offsets = [0, 0], sizes = [8, 256], strides = [1, 1]} : vector<8x512xf32> to vector<8x256xf32>
    %c0_17 = arith.constant 0 : index
    %c0_18 = arith.constant 0 : index
    %c0_19 = arith.constant 0 : index
    %28 = vector.load %arg6[%c0_17, %c0_18, %c0_19] : memref<2x8x256xf32, #tpu.memory_space<vmem>>, vector<1x8x256xf32>
    %29 = vector.shape_cast %28 : vector<1x8x256xf32> to vector<8x256xf32>
    %30 = vector.shape_cast %27 : vector<8x256xf32> to vector<1x8x256xf32>
    tpu.vector_store %arg6[%c0_17, %c0_18, %c0_19], %30 {strides = array<i32>} : memref<2x8x256xf32, #tpu.memory_space<vmem>>, vector<1x8x256xf32>,
    %31 = vector.extract_strided_slice %26 {offsets = [0, 256], sizes = [8, 256], strides = [1, 1]} : vector<8x512xf32> to vector<8x256xf32>
    %c1_20 = arith.constant 1 : index
    %c0_21 = arith.constant 0 : index
    %c0_22 = arith.constant 0 : index
    %32 = vector.load %arg6[%c1_20, %c0_21, %c0_22] : memref<2x8x256xf32, #tpu.memory_space<vmem>>, vector<1x8x256xf32>
    %33 = vector.shape_cast %32 : vector<1x8x256xf32> to vector<8x256xf32>
    %34 = vector.shape_cast %31 : vector<8x256xf32> to vector<1x8x256xf32>
    tpu.vector_store %arg6[%c1_20, %c0_21, %c0_22], %34 {strides = array<i32>} : memref<2x8x256xf32, #tpu.memory_space<vmem>>, vector<1x8x256xf32>,
    return
  }
  func.func @transform_0(%arg0: i32) -> (i32, i32, i32) {
    %c0_i32 = arith.constant 0 : i32
    %c0_i32_0 = arith.constant 0 : i32
    %c0_i32_1 = arith.constant 0 : i32
    %c0_i32_2 = arith.constant 0 : i32
    return %c0_i32, %c0_i32_0, %c0_i32_1 : i32, i32, i32
  }
  func.func @transform_1(%arg0: i32) -> (i32, i32) {
    %c0_i32 = arith.constant 0 : i32
    %c0_i32_0 = arith.constant 0 : i32
    %c0_i32_1 = arith.constant 0 : i32
    return %c0_i32, %c0_i32_0 : i32, i32
  }
  func.func @transform_2(%arg0: i32) -> (i32, i32) {
    %c0_i32 = arith.constant 0 : i32
    %c0_i32_0 = arith.constant 0 : i32
    %c0_i32_1 = arith.constant 0 : i32
    return %c0_i32, %c0_i32_0 : i32, i32
  }
  func.func @transform_3(%arg0: i32) -> (i32, i32) {
    %c0_i32 = arith.constant 0 : i32
    %c0_i32_0 = arith.constant 0 : i32
    %c0_i32_1 = arith.constant 0 : i32
    return %c0_i32, %c0_i32_0 : i32, i32
  }
  func.func @transform_4(%arg0: i32) -> (i32, i32) {
    %c0_i32 = arith.constant 0 : i32
    %c0_i32_0 = arith.constant 0 : i32
    %c0_i32_1 = arith.constant 0 : i32
    return %c0_i32, %c0_i32_0 : i32, i32
  }
  func.func @transform_5(%arg0: i32) -> (i32, i32, i32) {
    %c0_i32 = arith.constant 0 : i32
    %c0_i32_0 = arith.constant 0 : i32
    %c0_i32_1 = arith.constant 0 : i32
    %c0_i32_2 = arith.constant 0 : i32
    return %c0_i32, %c0_i32_0, %c0_i32_1 : i32, i32, i32
  }
}

</mosaic_0001>

<bundles_post_ra>
// kernel: tpu_custom_call.1
= control target key start
LH: loop header
LB: loop body
LE: loop exit
PB: predicated region body
PF: predicated region fallthrough
CT: control target
= control target key end

     0   :  { %vm56_vm0 = vcmask 64512   ;;  %v620_v5 = vmov 0.0   ;;  %s804_s0 = inlined_call_operand.vmem [shape: f32[2,8,256], index: 0, kind: input, shape index: {}]   ;;  %s805_s1 = inlined_call_operand.vmem [shape: f32[32,8], index: 1, kind: input, shape index: {}]   ;;  %s806_s2 = inlined_call_operand.vmem [shape: f32[32,1], index: 2, kind: input, shape index: {}]   ;;  %s807_s3 = inlined_call_operand.vmem [shape: f32[8,32], index: 3, kind: input, shape index: {}]   ;;  %s808_s4 = inlined_call_operand.vmem [shape: f32[8,1], index: 4, kind: input, shape index: {}]   ;;  %s809_s5 = inlined_call_operand.hbm [shape: f32[2,8,256], index: 5, kind: output, shape index: {}]  }
   0x1   :  { %v32_v0 = vld [vmem:[%s804_s0 + $0x8] sm:$0xff]  ;;  %v548_v1 = vld [vmem:[%s804_s0 + $0x18] sm:$0xff]  ;;  %v31_v2 = vld [vmem:[%s804_s0] sm:$0xff]  ;;  %133 = vmatprep.mubr.f32.mxu0 %v620_v5  ;;  %222 = vmatprep.mubr.f32.mxu1 %v620_v5 }
   0x2   :  { %99 = vmatprep.subr.mxu0 %v32_v0  ;;  %188 = vmatprep.subr.mxu1 %v548_v1  ;;  %v547_v3 = vld [vmem:[%s804_s0 + $0x10] sm:$0xff]  ;;  %v21_v4 = vld [vmem:[%s805_s1] sm:$0xff]  ;;  %v26_v6 = vld [vmem:[%s806_s2 + $0x8] sm:$0xff] }
   0x3   :  { %100 = vmatpush1.msra.mxu0 %v31_v2  ;;  %189 = vmatpush1.msra.mxu1 %v547_v3  ;;  %v28_v7 = vld [vmem:[%s806_s2 + $0x18] sm:$0xff] }
   0x4   :  { %549 = vmatmul.mubr.msk.f32.vlgmr.msra.gmra.mxu0 %vm56_vm0, %v21_v4  ;;  %553 = vmatmul.mubr.msk.f32.vlgmr.msra.gmra.mxu1 %vm56_vm0, %v21_v4 }
   0x5   :  { %10 = vsyncpa [#allocation3], 0  ;;  %139 = vmatprep.mubr.f32.mxu0 %v620_v5  ;;  %228 = vmatprep.mubr.f32.mxu1 %v620_v5  ;;  %v22_v8 = vld [vmem:[%s805_s1 + $0x8] sm:$0xff]  ;;  %v621_v9 = vmov 0   ;;  %v25_v10 = vld [vmem:[%s806_s2] sm:$0xff]  ;;  %vm380_vm1 = vcmask 261120  }
   0x6   :  { %565 = vset.pattern.permute.xlu1 %v621_v9  ;;  %564 = vset.pattern.permute.xlu0 %v621_v9  ;;  %v27_v11 = vld [vmem:[%s806_s2 + $0x10] sm:$0xff]  ;;  %v30_v13 = vld [vmem:[%s808_s4] sm:$0xff]  ;;  %v24_v14 = vld [vmem:[%s805_s1 + $0x18] sm:$0xff] }
   0x7   :  { %43 = vperm.xlu1 %565, %v26_v6   ;;  %53 = vperm.xlu0 %564, %v28_v7   ;;  %v23_v12 = vld [vmem:[%s805_s1 + $0x10] sm:$0xff] }
   0x8   :  { %550 = vmatmul.mubr.msk.f32.gmra.mxu0 %vm56_vm0, %v22_v8  ;;  %554 = vmatmul.mubr.msk.f32.gmra.mxu1 %vm56_vm0, %v22_v8 }
   0x9   :  { %145 = vmatprep.mubr.f32.mxu0 %v620_v5  ;;  %234 = vmatprep.mubr.f32.mxu1 %v620_v5 }
   0xb   :  { %38 = vperm.xlu1 %565, %v25_v10   ;;  %48 = vperm.xlu0 %564, %v27_v11  }
   0xc   :  { %551 = vmatmul.mubr.msk.f32.gmra.mxu0 %vm56_vm0, %v23_v12  ;;  %555 = vmatmul.mubr.msk.f32.gmra.mxu1 %vm56_vm0, %v23_v12 }
   0xd   :  { %151 = vmatprep.mubr.f32.mxu0 %v620_v5  ;;  %240 = vmatprep.mubr.f32.mxu1 %v620_v5 }
   0xf   :  { %377 = vperm.xlu0 %564, %v30_v13  }
  0x10   :  { %552 = vmatmul.mubr.msk.f32.gmra.mxu0 %vm56_vm0, %v24_v14  ;;  %556 = vmatmul.mubr.msk.f32.gmra.mxu1 %vm56_vm0, %v24_v14 }
  0x11   :  { %448 = vmatprep.mubr.f32.mxu0 %v620_v5  ;;  %519 = vmatprep.mubr.f32.mxu1 %v620_v5 }
  0x82   :  { %v44_v15 = vpop.permute.xlu1 %43  ;;  %v706_v25 = vpop.permute.xlu0 %53 }
  0x86   :  { %v39_v18 = vpop.permute.xlu1 %38  ;;  %v49_v38 = vpop.permute.xlu0 %48 }
  0xc4   :  { %v135_v16 = vpop.f32.mrf.mxu0  ;;  %v224_v17 = vpop.f32.mrf.mxu1 }
  0xc5   :  { %v702_v21 = vadd.f32 %v135_v16, %v39_v18  ;;  %v720_v36 = vadd.f32 %v224_v17, %v39_v18 }
  0xc6   :  { %v137_v19 = vpop.f32.mrf.mxu0  ;;  %v226_v20 = vpop.f32.mrf.mxu1 }
  0xc7   :  { %v704_v24 = vadd.f32 %v137_v19, %v39_v18  ;;  %v247_v29 = vmul.f32 %v702_v21, %v702_v21  ;;  %v724_v42 = vadd.f32 %v226_v20, %v39_v18  ;;  %v249_v48 = vmul.f32 %v720_v36, %v720_v36 }
  0xc8   :  { %v141_v22 = vpop.f32.mrf.mxu0  ;;  %v230_v23 = vpop.f32.mrf.mxu1 }
  0xc9   :  { %v708_v26 = vadd.f32 %v141_v22, %v44_v15  ;;  %v248_v31 = vmul.f32 %v704_v24, %v704_v24  ;;  %v263_v39 = vmul.f32 0.035677407, %v247_v29  ;;  %v736_v52 = vadd.f32 %v230_v23, %v44_v15 }
  0xca   :  { %v143_v27 = vpop.f32.mrf.mxu0  ;;  %v232_v28 = vpop.f32.mrf.mxu1  ;;  %v250_v56 = vmul.f32 %v724_v42, %v724_v42  ;;  %v265_v63 = vmul.f32 0.035677407, %v249_v48 }
  0xcb   :  { %v714_v32 = vadd.f32 %v143_v27, %v44_v15  ;;  %v251_v34 = vmul.f32 %v708_v26, %v708_v26  ;;  %v718_v35 = vadd.f32 %v232_v28, %v44_v15  ;;  %v264_v41 = vmul.f32 0.035677407, %v248_v31 }
  0xcc   :  { %v147_v30 = vpop.f32.mrf.mxu0  ;;  %v236_v33 = vpop.f32.mrf.mxu1  ;;  %v279_v51 = vadd.f32 0.7978846, %v263_v39  ;;  %v253_v4 = vmul.f32 %v736_v52, %v736_v52  ;;  %v266_v13 = vmul.f32 0.035677407, %v250_v56 }
  0xcd   :  { %v252_v37 = vmul.f32 %v714_v32, %v714_v32  ;;  %v254_v43 = vmul.f32 %v718_v35, %v718_v35  ;;  %v267_v45 = vmul.f32 0.035677407, %v251_v34  ;;  %v728_v47 = vadd.f32 %v147_v30, %v49_v38 }
  0xce   :  { %v149_v40 = vpop.f32.mrf.mxu0  ;;  %v238_v44 = vpop.f32.mrf.mxu1  ;;  %v732_v49 = vadd.f32 %v236_v33, %v49_v38  ;;  %v280_v55 = vadd.f32 0.7978846, %v264_v41  ;;  %v295_v3 = vmul.f32 %v279_v51, %v702_v21  ;;  %v269_v28 = vmul.f32 0.035677407, %v253_v4 }
  0xcf   :  { %v268_v46 = vmul.f32 0.035677407, %v252_v37  ;;  %v734_v50 = vadd.f32 %v149_v40, %v49_v38  ;;  %v255_v53 = vmul.f32 %v728_v47, %v728_v47  ;;  %v270_v57 = vmul.f32 0.035677407, %v254_v43 }
  0xd0   :  { %v153_v54 = vpop.f32.mrf.mxu0  ;;  %v242_v58 = vpop.f32.mrf.mxu1  ;;  %v283_v59 = vadd.f32 0.7978846, %v267_v45  ;;  %v257_v0 = vmul.f32 %v732_v49, %v732_v49  ;;  %v746_v1 = vadd.f32 %v238_v44, %v49_v38  ;;  %v296_v7 = vmul.f32 %v280_v55, %v704_v24 }
  0xd1   :  { %v284_v60 = vadd.f32 0.7978846, %v268_v46  ;;  %v271_v61 = vmul.f32 0.035677407, %v255_v53  ;;  %v256_v62 = vmul.f32 %v734_v50, %v734_v50  ;;  %v749_v2 = vadd.f32 %v153_v54, %v706_v25 }
  0xd2   :  { %v755_v6 = vadd.f32 %v242_v58, %v706_v25  ;;  %v286_v8 = vadd.f32 0.7978846, %v270_v57  ;;  %v258_v9 = vmul.f32 %v746_v1, %v746_v1  ;;  %v155_v11 = vpop.f32.mrf.mxu0  ;;  %v244_v12 = vpop.f32.mrf.mxu1  ;;  %v299_v14 = vmul.f32 %v283_v59, %v708_v26 }
  0xd3   :  { %v272_v5 = vmul.f32 0.035677407, %v256_v62  ;;  %v259_v10 = vmul.f32 %v749_v2, %v749_v2  ;;  %v300_v15 = vmul.f32 %v284_v60, %v714_v32  ;;  %v287_v16 = vadd.f32 0.7978846, %v271_v61 }
  0xd4   :  { %v273_v17 = vmul.f32 0.035677407, %v257_v0  ;;  %v274_v18 = vmul.f32 0.035677407, %v258_v9  ;;  %v261_v20 = vmul.f32 %v755_v6, %v755_v6  ;;  %566 = vtanh.f32 %v295_v3 }
  0xd5   :  { %v275_v19 = vmul.f32 0.035677407, %v259_v10  ;;  %v288_v22 = vadd.f32 0.7978846, %v272_v5  ;;  %v156_v23 = vadd.f32 %v155_v11, %v706_v25  ;;  %v768_v27 = vadd.f32 %v244_v12, %v706_v25 }
  0xd6   :  { %568 = vtanh.f32 %v296_v7  ;;  %v302_v29 = vmul.f32 %v286_v8, %v718_v35  ;;  %v303_v31 = vmul.f32 %v287_v16, %v728_v47  ;;  %v277_v33 = vmul.f32 0.035677407, %v261_v20 }
  0xd7   :  { %v291_v30 = vadd.f32 0.7978846, %v275_v19  ;;  %570 = vtanh.f32 %v299_v14  ;;  %v260_v34 = vmul.f32 %v156_v23, %v156_v23  ;;  %v289_v37 = vadd.f32 0.7978846, %v273_v17 }
  0xd8   :  { %572 = vtanh.f32 %v300_v15  ;;  %v290_v38 = vadd.f32 0.7978846, %v274_v18  ;;  %v304_v40 = vmul.f32 %v288_v22, %v734_v50  ;;  %v293_v41 = vadd.f32 0.7978846, %v277_v33 }
  0xd9   :  { %v307_v39 = vmul.f32 %v291_v30, %v749_v2  ;;  %v276_v25 = vmul.f32 0.035677407, %v260_v34  ;;  %v262_v43 = vmul.f32 %v768_v27, %v768_v27  ;;  %574 = vtanh.f32 %v302_v29 }
  0xda   :  { %v285_v44 = vadd.f32 0.7978846, %v269_v28  ;;  %576 = vtanh.f32 %v303_v31  ;;  %v309_v45 = vmul.f32 %v293_v41, %v755_v6  ;;  %v282_v48 = vadd.f32 0.7978846, %v266_v13 }
  0xdb   :  { %v292_v46 = vadd.f32 0.7978846, %v276_v25  ;;  %v306_v51 = vmul.f32 %v290_v38, %v746_v1  ;;  %578 = vtanh.f32 %v307_v39  ;;  %v278_v53 = vmul.f32 0.035677407, %v262_v43 }
  0xdc   :  { %v281_v54 = vadd.f32 0.7978846, %v265_v63  ;;  %v305_v55 = vmul.f32 %v289_v37, %v732_v49  ;;  %580 = vtanh.f32 %v304_v40  ;;  %v301_v58 = vmul.f32 %v285_v44, %v736_v52 }
  0xdd   :  { %v308_v56 = vmul.f32 %v292_v46, %v156_v23  ;;  %582 = vtanh.f32 %v309_v45  ;;  %v294_v57 = vadd.f32 0.7978846, %v278_v53  ;;  %v298_v59 = vmul.f32 %v282_v48, %v724_v42 }
  0xde   :  { %v297_v61 = vmul.f32 %v281_v54, %v720_v36  ;;  %v311_v10 = vmul.f32 0.5, %v702_v21  ;;  %v312_v12 = vmul.f32 0.5, %v704_v24  ;;  %v315_v13 = vmul.f32 0.5, %v708_v26 }
  0xdf   :  { %584 = vtanh.f32 %v308_v56  ;;  %v310_v60 = vmul.f32 %v294_v57, %v768_v27  ;;  %v316_v14 = vmul.f32 0.5, %v714_v32  ;;  %v319_v17 = vmul.f32 0.5, %v728_v47 }
  0xe0   :  { %586 = vtanh.f32 %v306_v51  ;;  %v324_v18 = vmul.f32 0.5, %v156_v23  ;;  %v320_v29 = vmul.f32 0.5, %v734_v50  ;;  %v322_v21 = vmul.f32 0.5, %v746_v1 }
  0xe1   :  { %588 = vtanh.f32 %v305_v55  ;;  %v567_v62 = vpop.eup %566  ;;  %v323_v30 = vmul.f32 0.5, %v749_v2  ;;  %v326_v26 = vmul.f32 0.5, %v768_v27  ;;  %v325_v41 = vmul.f32 0.5, %v755_v6 }
  0xe2   :  { %590 = vtanh.f32 %v310_v60  ;;  %v343_v2 = vadd.f32 1.0, %v567_v62  ;;  %v321_v46 = vmul.f32 0.5, %v732_v49  ;;  %v318_v54 = vmul.f32 0.5, %v718_v35  ;;  %v29_v35 = vld [vmem:[%s807_s3] sm:$0xff]  ;;  %s622_s3 = smov [#allocation2]  }
  0xe3   :  { %v569_v63 = vpop.eup %568  ;;  %592 = vtanh.f32 %v301_v58  ;;  %v317_v57 = vmul.f32 0.5, %v736_v52  ;;  %v314_v49 = vmul.f32 0.5, %v724_v42  ;;  %v313_v62 = vmul.f32 0.5, %v720_v36  ;;  %v378_v42 = vpop.permute.xlu0 %377  ;;  %s536_s17 = sshll.u32 %s622_s3, 4  ;;  %s537_s17 = int_to_ptr.vmem [resolvable:$true] %s536_s17 }
  0xe4   :  { %v571_v0 = vpop.eup %570  ;;  %594 = vtanh.f32 %v298_v59  ;;  %v344_v1 = vadd.f32 1.0, %v569_v63  ;;  %v359_v60 = vmul.f32 %v343_v2, %v311_v10  ;;  %s598_s18 = scalar_lea.vmem %s537_s17, 512  ;;  %p603_p1 = scmp.lt.s32.totalorder %s537_s17, %s537_s17 }
  0xe5   :  { %v573_v3 = vpop.eup %572  ;;  %596 = vtanh.f32 %v297_v61  ;;  %v347_v37 = vadd.f32 1.0, %v571_v0  ;;  %p599_p0 = scmp.ne.s32.totalorder %s537_s17, %s598_s18  ;;  %p604_p2 = scmp.lt.s32.totalorder %s598_s18, %s598_s18 }
  0xe6   :  { %v575_v4 = vpop.eup %574  ;;  %v348_v33 = vadd.f32 1.0, %v573_v3  ;;  %v360_v59 = vmul.f32 %v344_v1, %v312_v12 }
  0xe7   :  { %v577_v5 = vpop.eup %576  ;;  %v350_v27 = vadd.f32 1.0, %v575_v4  ;;  %v363_v53 = vmul.f32 %v347_v37, %v315_v13  ;;  %p605_p3 = por %p604_p2, %p603_p1 }
  0xe8   :  { %v579_v7 = vpop.eup %578  ;;  %v351_v28 = vadd.f32 1.0, %v577_v5  ;;  %v364_v51 = vmul.f32 %v348_v33, %v316_v14 }
  0xe9   :  { %v581_v8 = vpop.eup %580  ;;  %v355_v15 = vadd.f32 1.0, %v579_v7  ;;  %v366_v61 = vmul.f32 %v350_v27, %v318_v54  ;;  %p606_p4 = pnand %p605_p3, %p599_p0 }
  0xea   :  { %v583_v9 = vpop.eup %582  ;;  %v352_v20 = vadd.f32 1.0, %v581_v8  ;;  %v367_v43 = vmul.f32 %v351_v28, %v319_v17 }
  0xeb   :  { %v357_v31 = vadd.f32 1.0, %v583_v9  ;;  %v371_v47 = vmul.f32 %v355_v15, %v323_v30 }
  0xec   :  { %v585_v11 = vpop.eup %584  ;;  %v368_v50 = vmul.f32 %v352_v20, %v320_v29 }
  0xed   :  { %v587_v16 = vpop.eup %586  ;;  %v356_v19 = vadd.f32 1.0, %v585_v11  ;;  %v373_v48 = vmul.f32 %v357_v31, %v325_v41 }
  0xee   :  { %v589_v22 = vpop.eup %588  ;;  %v354_v38 = vadd.f32 1.0, %v587_v16 }
  0xef   :  { %v591_v24 = vpop.eup %590  ;;  %v372_v32 = vmul.f32 %v356_v19, %v324_v18  ;;  %v353_v40 = vadd.f32 1.0, %v589_v22 }
  0xf0   :  { %v593_v34 = vpop.eup %592  ;;  %v358_v23 = vadd.f32 1.0, %v591_v24  ;;  %v370_v6 = vmul.f32 %v354_v38, %v322_v21 }
  0xf1   :  { %v595_v39 = vpop.eup %594  ;;  %408 = vmatprep.subr.mxu0 %v372_v32  ;;  %v349_v45 = vadd.f32 1.0, %v593_v34  ;;  %v369_v58 = vmul.f32 %v353_v40, %v321_v46 }
  0xf2   :  { %v597_v25 = vpop.eup %596  ;;  %v374_v44 = vmul.f32 %v358_v23, %v326_v26  ;;  %409 = vmatpush1.msra.mxu0 %v371_v47  ;;  %v346_v55 = vadd.f32 1.0, %v595_v39 }
  0xf3   :  { %410 = vmatprep.subr.mxu0 %v368_v50  ;;  %v345_v56 = vadd.f32 1.0, %v597_v25  ;;  %v365_v63 = vmul.f32 %v349_v45, %v317_v57 }
  0xf4   :  { %479 = vmatprep.subr.mxu1 %v374_v44  ;;  %411 = vmatpush1.msra.mxu0 %v367_v43  ;;  %v362_v52 = vmul.f32 %v346_v55, %v314_v49 }
  0xf5   :  { %480 = vmatpush1.msra.mxu1 %v373_v48  ;;  %412 = vmatprep.subr.mxu0 %v364_v51  ;;  %v361_v0 = vmul.f32 %v345_v56, %v313_v62 }
  0xf6   :  { %481 = vmatprep.subr.mxu1 %v370_v6  ;;  %413 = vmatpush1.msra.mxu0 %v363_v53 }
  0xf7   :  { %482 = vmatpush1.msra.mxu1 %v369_v58  ;;  %414 = vmatprep.subr.mxu0 %v360_v59 }
  0xf8   :  { %483 = vmatprep.subr.mxu1 %v366_v61  ;;  %415 = vmatpush1.msra.mxu0 %v359_v60 }
  0xf9   :  { %484 = vmatpush1.msra.mxu1 %v365_v63  ;;  %557 = vmatmul.mubr.msk.f32.vlgmr.msra.gmra.mxu0 %vm380_vm1, %v29_v35 }
  0xfa   :  { %485 = vmatprep.subr.mxu1 %v362_v52 }
  0xfb   :  { %486 = vmatpush1.msra.mxu1 %v361_v0 }
  0xfc   :  { %558 = vmatmul.mubr.msk.f32.vlgmr.msra.gmra.mxu1 %vm380_vm1, %v29_v35 }
 0x1b9   :  { %v450_v3 = vpop.f32.mrf.mxu0 }
 0x1ba   :  { %v451_v4 = vadd.f32 %v450_v3, %v378_v42 }
 0x1bb   :  { %v452_v5 = vpop.f32.mrf.mxu0 }
 0x1bc   :  { %526 = vst [vmem:[#allocation2] sm:$0xff] %v451_v4  ;;  %v521_v36 = vpop.f32.mrf.mxu1  ;;  %v453_v7 = vadd.f32 %v452_v5, %v378_v42 }
 0x1bd   :  { %v522_v8 = vadd.f32 %v521_v36, %v378_v42 }
 0x1be   :  { %527 = vst [vmem:[#allocation2 + $0x8] sm:$0xff] %v453_v7  ;;  %v523_v9 = vpop.f32.mrf.mxu1 }
 0x1bf   :  { %529 = vst [vmem:[#allocation2 + $0x10] sm:$0xff] %v522_v8  ;;  %v524_v10 = vadd.f32 %v523_v9, %v378_v42 }
 0x1c1   :  { %530 = vst [vmem:[#allocation2 + $0x18] sm:$0xff] %v524_v10 }
 0x1c2   :  { %609 = shalt.err (!%p606_p4)
}
 0x1c3   :  { %s623_s19 = smov 256   ;;  %s624_s20 = smov 16  }
 0x1c4   :  { %542 = dma.vmem_to_hbm [thread:$0]  %s537_s17, 512, %s809_s5, [#allocation3], %s623_s19, %s623_s19, %s624_s20  }
 0x1c5   :  { %618 = dma.done.wait [#allocation3], 512  }
 0x1c6   :  { %619 = vsyncadd [#allocation3], 4294966784 }
 0x1c7   :  { %546 = vsyncpa [#allocation3], 1 }

</bundles_post_ra>
